<compile_context>
chip_gen: v7x
topology: tpu7x:2x2x1
jax: 0.10.0
libtpu: 0.0.40
codegen_flags: <defaults>
</compile_context>

<pallas_src>
import numpy as np

import jax
import jax.numpy as jnp
from jax.experimental import pallas as pl
from jax.experimental.pallas import tpu as pltpu


def _round_up(x, m):
    return (x + m - 1) // m * m


def dndt_kernel(x_ref, wb_ref, sel_hi_ref, sel_lo_ref, l2c_ref, y_ref):
    """Batch-on-lane DNDT forward for one batch tile (factored Kronecker).

    x_ref      : (F+1, TN)             features + trailing ones row (bias fold), batch on lanes
    wb_ref     : (fb_pad, F+1)         scaled cut weights; last column = scaled bin offsets
    sel_hi_ref : (n_hi_pad, fb_pad)    one-hot digit selection, hi (most-significant) group
    sel_lo_ref : (n_lo_pad, fb_pad)    one-hot digit selection, lo group
    l2c_ref    : (n_lo*ncp, n_hi_pad)  leaves2classes re-indexed: [b*ncp + c, a] = l2c[a*n_lo+b, c]
    y_ref      : (ncp, TN)             output logits (classes padded to 8), batch on lanes
    """
    # z[f*n_bins + j, n] = (x[f, n] * (j+1) + b_j) / T   — one tiny-K MXU matmul, bias folded.
    z = jnp.dot(wb_ref[...], x_ref[...], preferred_element_type=jnp.float32)

    # Numerically stable log(sigmoid(z)) = min(z, 0) - log(1 + exp(-|z|))   (EUP work).
    log_sig = jnp.minimum(z, 0.0) - jnp.log(1.0 + jnp.exp(-jnp.abs(z)))

    # Factored Kronecker expansion: exp over two small groups instead of all n_leaves rows.
    a_hi = jnp.exp(jnp.dot(sel_hi_ref[...], log_sig,
                           preferred_element_type=jnp.float32))    # (n_hi_pad, TN)
    a_lo = jnp.exp(jnp.dot(sel_lo_ref[...], log_sig,
                           preferred_element_type=jnp.float32))    # (n_lo_pad, TN)

    # Hi-group contraction folded into the leaves2classes projection (single MXU matmul):
    #   p[b*ncp + c, n] = sum_a l2c[a*n_lo + b, c] * a_hi[a, n]
    p = jnp.dot(l2c_ref[...], a_hi, preferred_element_type=jnp.float32)   # (n_lo*ncp, TN)

    ncp = y_ref.shape[0]
    n_lo = l2c_ref.shape[0] // ncp
    # Combine with the lo group: y[c, n] = sum_b a_lo[b, n] * p[b*ncp + c, n]
    acc = a_lo[0:1, :] * p[0:ncp, :]
    for b in range(1, n_lo):               # tiny static loop: n_lo = n_bins ** floor(F/2)
        acc = acc + a_lo[b:b + 1, :] * p[b * ncp:(b + 1) * ncp, :]
    y_ref[...] = acc


def dndt_forward(x, beta, leaves2classes, n_bins, temperature, *, block_n=None):
    n, n_features = x.shape
    n_leaves, n_classes = leaves2classes.shape
    assert n_leaves == n_bins ** n_features

    f = n_features
    fb = f * n_bins
    fb_pad = _round_up(fb, 8)
    ncp = _round_up(max(n_classes, 8), 8)
    f_hi = (f + 1) // 2                      # hi group = most-significant ceil(F/2) digits
    f_lo = f - f_hi
    n_hi = n_bins ** f_hi
    n_lo = n_bins ** f_lo
    n_hi_pad = _round_up(n_hi, 8)
    n_lo_pad = _round_up(n_lo, 8)
    inv_t = 1.0 / float(temperature)

    # ---- beta2b(): b = cat([0], cumsum(-sort(beta))) (tiny wrapper-side JAX) ----
    beta_sorted = jnp.sort(jnp.asarray(beta, jnp.float32))
    b_bins = jnp.concatenate([jnp.zeros((1,), jnp.float32), jnp.cumsum(-beta_sorted)])

    # ---- host-precomputed constants ----
    # wb[f*n_bins + j, f] = (j+1)/T ; wb[:, F] (applied to the ones row) = b_j/T.
    w_np = np.zeros((fb_pad, f + 1), np.float32)
    for ff in range(f):
        w_np[ff * n_bins:(ff + 1) * n_bins, ff] = (
            np.arange(1, n_bins + 1, dtype=np.float32) * inv_t)
    wb = jnp.asarray(w_np)
    wb = wb.at[:fb, f].set(jnp.tile(b_bins, f) * jnp.float32(inv_t))

    # One-hot digit selections (feature 0 is the most significant Kronecker digit).
    sel_hi = np.zeros((n_hi_pad, fb_pad), np.float32)
    for ff in range(f_hi):
        stride = n_bins ** (f_hi - 1 - ff)
        digits = (np.arange(n_hi) // stride) % n_bins
        sel_hi[np.arange(n_hi), ff * n_bins + digits] = 1.0
    sel_lo = np.zeros((n_lo_pad, fb_pad), np.float32)
    for fl in range(f_lo):
        stride = n_bins ** (f_lo - 1 - fl)
        digits = (np.arange(n_lo) // stride) % n_bins
        sel_lo[np.arange(n_lo), (f_hi + fl) * n_bins + digits] = 1.0
    sel_hi = jnp.asarray(sel_hi)
    sel_lo = jnp.asarray(sel_lo)

    # leaves2classes re-indexed so the hi-group contraction is one matmul:
    #   l2c_flat[b*ncp + c, a] = leaves2classes[a*n_lo + b, c]
    l2c3 = jnp.asarray(leaves2classes, jnp.float32).reshape(n_hi, n_lo, n_classes)
    l2c_bca = jnp.transpose(l2c3, (1, 2, 0))                      # (n_lo, n_classes, n_hi)
    l2c_bca = jnp.pad(l2c_bca, ((0, 0), (0, ncp - n_classes), (0, 0)))
    l2c_flat = jnp.zeros((n_lo * ncp, n_hi_pad), jnp.float32)
    l2c_flat = l2c_flat.at[:, :n_hi].set(l2c_bca.reshape(n_lo * ncp, n_hi))

    # ---- batch tile size: lane-dense, VMEM-budgeted, >=2 grid steps when possible ----
    per_col_bytes = 4 * (2 * (f + 1) + 2 * ncp          # double-buffered x / y tiles
                         + 2 * fb_pad                   # z, log_sig
                         + n_hi_pad + n_lo_pad          # a_hi, a_lo
                         + n_lo * ncp + ncp)            # p, acc
    const_bytes = 4 * (fb_pad * (f + 1) + (n_hi_pad + n_lo_pad) * fb_pad
                       + n_lo * ncp * n_hi_pad)
    try:
        vmem_cap = int(pltpu.get_tpu_info().vmem_capacity_bytes)
    except Exception:
        vmem_cap = 64 * 1024 * 1024                     # v7x physical VMEM (smallest gen)
    budget = min(vmem_cap // 4, 24 * 1024 * 1024)
    avail = max(budget - 2 * const_bytes, 512 * 1024)   # constants may be double-buffered
    if block_n is None:
        block_n = max(128, min(8192, (avail // per_col_bytes) // 128 * 128))
    n128 = pl.cdiv(n, 128) * 128
    if n128 >= 256:
        # keep at least 2 grid steps so ("parallel",) can use both v7x TensorCores
        block_n = min(block_n, max(128, (n128 // 2 + 127) // 128 * 128))
    else:
        block_n = 128
    n_pad = pl.cdiv(n, block_n) * block_n
    grid = (n_pad // block_n,)

    # ---- batch-on-lane input with trailing ones row (bias fold), zero-padded batch ----
    x_aug = jnp.zeros((f + 1, n_pad), jnp.float32)
    x_aug = x_aug.at[:f, :n].set(jnp.asarray(x, jnp.float32).T)
    x_aug = x_aug.at[f, :].set(1.0)

    footprint = per_col_bytes * block_n + 2 * const_bytes
    vmem_limit = int(min(max(2 * footprint, 4 * 1024 * 1024), 32 * 1024 * 1024))

    cost = pl.CostEstimate(
        flops=2 * n_pad * (fb_pad * (f + 1) + (n_hi_pad + n_lo_pad) * fb_pad
                           + n_lo * ncp * n_hi_pad + n_lo * ncp),
        transcendentals=n_pad * (2 * fb_pad + n_hi_pad + n_lo_pad),
        bytes_accessed=4 * ((f + 1) * n_pad + ncp * n_pad + fb_pad * (f + 1)
                            + (n_hi_pad + n_lo_pad) * fb_pad + n_lo * ncp * n_hi_pad),
    )

    y_t = pl.pallas_call(
        dndt_kernel,
        out_shape=jax.ShapeDtypeStruct((ncp, n_pad), jnp.float32),
        grid=grid,
        in_specs=[
            pl.BlockSpec((f + 1, block_n), lambda i: (0, i)),      # pipelined batch tile
            pl.BlockSpec((fb_pad, f + 1), lambda i: (0, 0)),       # resident constants
            pl.BlockSpec((n_hi_pad, fb_pad), lambda i: (0, 0)),    # (constant index_map →
            pl.BlockSpec((n_lo_pad, fb_pad), lambda i: (0, 0)),    #  re-DMA is elided; tiny
            pl.BlockSpec((n_lo * ncp, n_hi_pad), lambda i: (0, 0)),#  footprint either way)
        ],
        out_specs=pl.BlockSpec((ncp, block_n), lambda i: (0, i)),
        compiler_params=pltpu.CompilerParams(
            dimension_semantics=("parallel",),
            vmem_limit_bytes=vmem_limit,
        ),
        cost_estimate=cost,
    )(x_aug, wb, sel_hi, sel_lo, l2c_flat)

    return y_t[:n_classes, :n].T                                   # (N, n_classes)


def dndt_reference(x, beta, leaves2classes, n_bins, temperature):
    """Plain-JAX mirror of the torch forward (for correctness checking)."""
    n, n_features = x.shape
    w = jnp.arange(1, n_bins + 1, dtype=jnp.float32).reshape(1, n_bins)
    beta_sorted = jnp.sort(beta.astype(jnp.float32))
    b = jnp.concatenate([jnp.zeros((1,), jnp.float32), jnp.cumsum(-beta_sorted)])
    sigma = jax.nn.sigmoid((x[:, :, None] * w[None] + b) / temperature)   # (N, F, n_bins)
    leaves = jnp.ones((n, 1), jnp.float32)
    for f in range(n_features):                                    # reduce(kronecker, ...)
        leaves = (leaves[:, :, None] * sigma[:, f, None, :]).reshape(n, -1)
    return leaves @ leaves2classes


if __name__ == "__main__":
    # Small shapes consistent with the module's forward.
    n_features = 3
    n_cuts = 3
    n_bins = n_cuts + 1
    n_classes = 4
    batch = 8
    temperature = 0.1

    key = jax.random.PRNGKey(0)
    k_x, k_beta, k_l2c = jax.random.split(key, 3)

    x = jax.random.normal(k_x, (batch, n_features), dtype=jnp.float32)
    beta = jax.random.uniform(k_beta, (n_cuts,), dtype=jnp.float32)            # torch.rand
    leaves2classes = jax.random.uniform(
        k_l2c, (n_bins ** n_features, n_classes), dtype=jnp.float32            # torch.rand
    )

    y = dndt_forward(x, beta, leaves2classes, n_bins, temperature)
    y = jax.block_until_ready(y)

    y_ref = dndt_reference(x, beta, leaves2classes, n_bins, temperature)
    assert y.shape == (batch, n_classes)
    assert jnp.allclose(y, y_ref, rtol=1e-4, atol=1e-4), (
        f"max abs err = {jnp.max(jnp.abs(y - y_ref))}"
    )

    print("KERNEL_OK")
</pallas_src>

<mosaic_0001>
module attributes {stable_mosaic.version = 11 : i64} {
  func.func @dndt_kernel(%arg0: i32, %arg1: memref<4x128xf32, #tpu.memory_space<vmem>>, %arg2: memref<16x4xf32, #tpu.memory_space<vmem>>, %arg3: memref<16x16xf32, #tpu.memory_space<vmem>>, %arg4: memref<8x16xf32, #tpu.memory_space<vmem>>, %arg5: memref<32x16xf32, #tpu.memory_space<vmem>>, %arg6: memref<8x128xf32, #tpu.memory_space<vmem>>) attributes {dimension_semantics = [#tpu.dimension_semantics<parallel>], iteration_bounds = array<i64: 1>, scalar_prefetch = 0 : i64, scratch_operands = 0 : i64, tpu.core_type = #tpu.core_type<tc>, window_params = [{transform_indices = @transform_0, window_bounds = array<i64: 4, 128>}, {pipeline_mode = #tpu.pipeline_mode<synchronous>, transform_indices = @transform_1, window_bounds = array<i64: 16, 4>}, {pipeline_mode = #tpu.pipeline_mode<synchronous>, transform_indices = @transform_2, window_bounds = array<i64: 16, 16>}, {pipeline_mode = #tpu.pipeline_mode<synchronous>, transform_indices = @transform_3, window_bounds = array<i64: 8, 16>}, {pipeline_mode = #tpu.pipeline_mode<synchronous>, transform_indices = @transform_4, window_bounds = array<i64: 32, 16>}, {transform_indices = @transform_5, window_bounds = array<i64: 8, 128>}]} {
    %c0 = arith.constant 0 : index
    %c0_0 = arith.constant 0 : index
    %0 = vector.load %arg2[%c0, %c0_0] : memref<16x4xf32, #tpu.memory_space<vmem>>, vector<16x4xf32>
    %c0_1 = arith.constant 0 : index
    %c0_2 = arith.constant 0 : index
    %1 = vector.load %arg1[%c0_1, %c0_2] : memref<4x128xf32, #tpu.memory_space<vmem>>, vector<4x128xf32>
    %cst = arith.constant dense<0.000000e+00> : vector<16x128xf32>
    %2 = tpu.matmul %0, %1, %cst {dimension_numbers = #tpu.dot_dimension_numbers<[1], [0], [0], [1], [0, 0, 1, 1], [], []>} : vector<16x4xf32>, vector<4x128xf32>, vector<16x128xf32> -> vector<16x128xf32>
    %cst_3 = arith.constant 0.000000e+00 : f32
    %3 = vector.broadcast %cst_3 : f32 to vector<16x128xf32>
    %4 = arith.minimumf %2, %3 : vector<16x128xf32>
    %5 = math.absf %2 : vector<16x128xf32>
    %cst_4 = arith.constant 0.000000e+00 : f32
    %6 = vector.broadcast %cst_4 : f32 to vector<16x128xf32>
    %7 = arith.subf %6, %5 : vector<16x128xf32>
    %8 = math.exp %7 : vector<16x128xf32>
    %cst_5 = arith.constant 1.000000e+00 : f32
    %9 = vector.broadcast %cst_5 : f32 to vector<16x128xf32>
    %10 = arith.addf %9, %8 : vector<16x128xf32>
    %11 = math.log %10 : vector<16x128xf32>
    %12 = arith.subf %4, %11 : vector<16x128xf32>
    %c0_6 = arith.constant 0 : index
    %c0_7 = arith.constant 0 : index
    %13 = vector.load %arg3[%c0_6, %c0_7] : memref<16x16xf32, #tpu.memory_space<vmem>>, vector<16x16xf32>
    %cst_8 = arith.constant dense<0.000000e+00> : vector<16x128xf32>
    %14 = tpu.matmul %13, %12, %cst_8 {dimension_numbers = #tpu.dot_dimension_numbers<[1], [0], [0], [1], [0, 0, 1, 1], [], []>} : vector<16x16xf32>, vector<16x128xf32>, vector<16x128xf32> -> vector<16x128xf32>
    %15 = math.exp %14 : vector<16x128xf32>
    %c0_9 = arith.constant 0 : index
    %c0_10 = arith.constant 0 : index
    %16 = vector.load %arg4[%c0_9, %c0_10] : memref<8x16xf32, #tpu.memory_space<vmem>>, vector<8x16xf32>
    %cst_11 = arith.constant dense<0.000000e+00> : vector<8x128xf32>
    %17 = tpu.matmul %16, %12, %cst_11 {dimension_numbers = #tpu.dot_dimension_numbers<[1], [0], [0], [1], [0, 0, 1, 1], [], []>} : vector<8x16xf32>, vector<16x128xf32>, vector<8x128xf32> -> vector<8x128xf32>
    %18 = math.exp %17 : vector<8x128xf32>
    %c0_12 = arith.constant 0 : index
    %c0_13 = arith.constant 0 : index
    %19 = vector.load %arg5[%c0_12, %c0_13] : memref<32x16xf32, #tpu.memory_space<vmem>>, vector<32x16xf32>
    %cst_14 = arith.constant dense<0.000000e+00> : vector<32x128xf32>
    %20 = tpu.matmul %19, %15, %cst_14 {dimension_numbers = #tpu.dot_dimension_numbers<[1], [0], [0], [1], [0, 0, 1, 1], [], []>} : vector<32x16xf32>, vector<16x128xf32>, vector<32x128xf32> -> vector<32x128xf32>
    %21 = vector.extract_strided_slice %18 {offsets = [0, 0], sizes = [1, 128], strides = [1, 1]} : vector<8x128xf32> to vector<1x128xf32>
    %22 = vector.extract_strided_slice %20 {offsets = [0, 0], sizes = [8, 128], strides = [1, 1]} : vector<32x128xf32> to vector<8x128xf32>
    %23 = vector.broadcast %21 : vector<1x128xf32> to vector<8x128xf32>
    %24 = arith.mulf %23, %22 : vector<8x128xf32>
    %25 = vector.extract_strided_slice %18 {offsets = [1, 0], sizes = [1, 128], strides = [1, 1]} : vector<8x128xf32> to vector<1x128xf32>
    %26 = vector.extract_strided_slice %20 {offsets = [8, 0], sizes = [8, 128], strides = [1, 1]} : vector<32x128xf32> to vector<8x128xf32>
    %27 = vector.broadcast %25 : vector<1x128xf32> to vector<8x128xf32>
    %28 = arith.mulf %27, %26 : vector<8x128xf32>
    %29 = arith.addf %24, %28 : vector<8x128xf32>
    %30 = vector.extract_strided_slice %18 {offsets = [2, 0], sizes = [1, 128], strides = [1, 1]} : vector<8x128xf32> to vector<1x128xf32>
    %31 = vector.extract_strided_slice %20 {offsets = [16, 0], sizes = [8, 128], strides = [1, 1]} : vector<32x128xf32> to vector<8x128xf32>
    %32 = vector.broadcast %30 : vector<1x128xf32> to vector<8x128xf32>
    %33 = arith.mulf %32, %31 : vector<8x128xf32>
    %34 = arith.addf %29, %33 : vector<8x128xf32>
    %35 = vector.extract_strided_slice %18 {offsets = [3, 0], sizes = [1, 128], strides = [1, 1]} : vector<8x128xf32> to vector<1x128xf32>
    %36 = vector.extract_strided_slice %20 {offsets = [24, 0], sizes = [8, 128], strides = [1, 1]} : vector<32x128xf32> to vector<8x128xf32>
    %37 = vector.broadcast %35 : vector<1x128xf32> to vector<8x128xf32>
    %38 = arith.mulf %37, %36 : vector<8x128xf32>
    %39 = arith.addf %34, %38 : vector<8x128xf32>
    %c0_15 = arith.constant 0 : index
    %c0_16 = arith.constant 0 : index
    %40 = vector.load %arg6[%c0_15, %c0_16] : memref<8x128xf32, #tpu.memory_space<vmem>>, vector<8x128xf32>
    tpu.vector_store %arg6[%c0_15, %c0_16], %39 {strides = array<i32>} : memref<8x128xf32, #tpu.memory_space<vmem>>, vector<8x128xf32>,
    return
  }
  func.func @transform_0(%arg0: i32) -> (i32, i32) {
    %c0_i32 = arith.constant 0 : i32
    %c0_i32_0 = arith.constant 0 : i32
    return %c0_i32, %arg0 : i32, i32
  }
  func.func @transform_1(%arg0: i32) -> (i32, i32) {
    %c0_i32 = arith.constant 0 : i32
    %c0_i32_0 = arith.constant 0 : i32
    %c0_i32_1 = arith.constant 0 : i32
    return %c0_i32, %c0_i32_0 : i32, i32
  }
  func.func @transform_2(%arg0: i32) -> (i32, i32) {
    %c0_i32 = arith.constant 0 : i32
    %c0_i32_0 = arith.constant 0 : i32
    %c0_i32_1 = arith.constant 0 : i32
    return %c0_i32, %c0_i32_0 : i32, i32
  }
  func.func @transform_3(%arg0: i32) -> (i32, i32) {
    %c0_i32 = arith.constant 0 : i32
    %c0_i32_0 = arith.constant 0 : i32
    %c0_i32_1 = arith.constant 0 : i32
    return %c0_i32, %c0_i32_0 : i32, i32
  }
  func.func @transform_4(%arg0: i32) -> (i32, i32) {
    %c0_i32 = arith.constant 0 : i32
    %c0_i32_0 = arith.constant 0 : i32
    %c0_i32_1 = arith.constant 0 : i32
    return %c0_i32, %c0_i32_0 : i32, i32
  }
  func.func @transform_5(%arg0: i32) -> (i32, i32) {
    %c0_i32 = arith.constant 0 : i32
    %c0_i32_0 = arith.constant 0 : i32
    return %c0_i32, %arg0 : i32, i32
  }
}

</mosaic_0001>

<bundles_post_ra>
// kernel: tpu_custom_call.1
= control target key start
LH: loop header
LB: loop body
LE: loop exit
PB: predicated region body
PF: predicated region fallthrough
CT: control target
= control target key end

     0   :  { %vm31_vm0 = vcmask 1043456   ;;  %vm24_vm1 = vcmask 31744   ;;  %s622_s0 = inlined_call_operand.vmem [shape: f32[4,128], index: 0, kind: input, shape index: {}]   ;;  %s623_s1 = inlined_call_operand.vmem [shape: f32[16,4], index: 1, kind: input, shape index: {}]   ;;  %s624_s2 = inlined_call_operand.vmem [shape: f32[16,16], index: 2, kind: input, shape index: {}]   ;;  %s625_s3 = inlined_call_operand.vmem [shape: f32[8,16], index: 3, kind: input, shape index: {}]   ;;  %s626_s4 = inlined_call_operand.vmem [shape: f32[32,16], index: 4, kind: input, shape index: {}]   ;;  %s627_s5 = inlined_call_operand.hbm [shape: f32[8,128], index: 5, kind: output, shape index: {}]  }
   0x1   :  { %v23_v0 = vld [vmem:[%s622_s0] sm:$0xf]  ;;  %v22_v2 = vld [vmem:[%s623_s1 + $0x8] sm:$0xff] }
   0x2   :  { %v21_v1 = vld [vmem:[%s623_s1] sm:$0xff]  ;;  %457 = vmatprep.subr.msk.mxu0 %vm31_vm0, %v23_v0 }
   0x3   :  { %459 = vmatprep.mubr.msk.f32.mxu0 %vm24_vm1, %v21_v1 }
   0x4   :  { %10 = vsyncpa [#allocation3], 0  ;;  %458 = vmatpush3.msk.msra.mxu0 %vm31_vm0, %v23_v0  ;;  %v128_v3 = vld [vmem:[%s624_s2] sm:$0xff]  ;;  %vm130_vm2 = vcmask 130048   ;;  %v129_v25 = vld [vmem:[%s624_s2 + $0x8] sm:$0xff]  ;;  %v539_v26 = vmov 0.0|0.0   ;;  %v393_v43 = vlaneseq }
   0x5   :  { %460 = vmatmul.mubr.msk.f32.vlgmr.msra.gmra.mrb[0].mxu0 %vm24_vm1, %v22_v2  ;;  %v216_v27 = vld [vmem:[%s625_s3] sm:$0xff]  ;;  %vm540_vm3 = vmmov 0   ;;  %v541_v28 = vmov 0.0   ;;  %v293_v37 = vld [vmem:[%s626_s4 + $0x8] sm:$0xff]  ;;  %v294_v38 = vld [vmem:[%s626_s4 + $0x10] sm:$0xff] }
   0x6   :  { %466 = vmatprep.mubr.msk.f32.mxu0 %vm130_vm2, %v128_v3  ;;  %v292_v29 = vld [vmem:[%s626_s4] sm:$0xff]  ;;  %v295_v39 = vld [vmem:[%s626_s4 + $0x18] sm:$0xff]  ;;  %v394_v44 = vshrl.u32 %v393_v43, 7  ;;  %s542_s4 = smov [#allocation2]  }
   0x7   :  { %480 = vmatprep.mubr.msk.f32.mxu1 %vm130_vm2, %v292_v29  ;;  %s423_s9 = sshll.u32 %s542_s4, 4  ;;  %s424_s9 = int_to_ptr.vmem [resolvable:$true] %s423_s9 }
   0x8   :  { %v400_v45 = vsub.s32 1, %v394_v44  ;;  %v395_v47 = vsub.s32 0, %v394_v44  ;;  %v412_v49 = vsub.s32 3, %v394_v44  ;;  %v406_v52 = vsub.s32 2, %v394_v44  ;;  %s515_s10 = scalar_lea.vmem %s424_s9, 128  ;;  %p520_p1 = scmp.lt.s32.totalorder %s424_s9, %s424_s9 }
   0x9   :  { %p516_p0 = scmp.ne.s32.totalorder %s424_s9, %s515_s10  ;;  %p521_p2 = scmp.lt.s32.totalorder %s515_s10, %s515_s10 }
   0xb   :  { %p522_p3 = por %p521_p2, %p520_p1 }
   0xd   :  { %p523_p4 = pnand %p522_p3, %p516_p0 }
  0xd8   :  { %v461_v4 = vpop.f32.mrb[0].mxu0 }
  0xd9   :  { %v113_v5 = vand.u32 2147483647, %v461_v4  ;;  %v101_v6 = vpop.f32.mrb[1].mxu0  ;;  %v111_v18 = vmin.f32 %v461_v4, 0.0 }
  0xda   :  { %v112_v7 = vand.u32 2147483647, %v101_v6  ;;  %v110_v20 = vmin.f32 %v101_v6, 0.0 }
  0xdb   :  { %v115_v8 = vsub.f32 0.0, %v113_v5 }
  0xdc   :  { %v114_v9 = vsub.f32 0.0, %v112_v7 }
  0xdd   :  { %v118_v10 = vmul.f32 1.442695, %v115_v8 }
  0xde   :  { %v116_v11 = vmul.f32 1.442695, %v114_v9 }
  0xdf   :  { %501 = vpow2.f32 %v118_v10 }
  0xe0   :  { %503 = vpow2.f32 %v116_v11 }
  0xe9   :  { %v502_v12 = vpop.eup %501 }
  0xea   :  { %v504_v13 = vpop.eup %503  ;;  %v121_v14 = vadd.f32 1.0, %v502_v12 }
  0xeb   :  { %v120_v15 = vadd.f32 1.0, %v504_v13 }
  0xec   :  { %505 = vlog2.f32 %v121_v14 }
  0xed   :  { %507 = vlog2.f32 %v120_v15 }
  0xf6   :  { %v506_v16 = vpop.eup %505 }
  0xf7   :  { %v508_v17 = vpop.eup %507  ;;  %v125_v19 = vmul.f32 0.6931472, %v506_v16 }
  0xf8   :  { %v123_v21 = vmul.f32 0.6931472, %v508_v17 }
  0xf9   :  { %v127_v22 = vsub.f32 %v111_v18, %v125_v19 }
  0xfa   :  { %v126_v23 = vsub.f32 %v110_v20, %v123_v21 }
  0xfc   :  { %v486_v24 = vpack.c.bf16 %v127_v22, %v126_v23 }
  0xfe   :  { %487 = vmatprep.subr.bf16.mxu0 %v486_v24 }
  0xff   :  { %489 = vmatpush3.bf16.msra.mxu0 %v486_v24 }
 0x100   :  { %490 = vmatprep.subr.bf16.mxu0 %v539_v26 }
 0x102   :  { %467 = vmatmul.mubr.msk.f32.vlgmr.msra.gmra.mrb[2].mxu0 %vm130_vm2, %v129_v25 }
 0x103   :  { %492 = vmatpush3.bf16.msra.mxu0 %v486_v24  ;;  %473 = vmatprep.mubr.msk.f32.mxu0 %vm540_vm3, %v541_v28 }
 0x106   :  { %474 = vmatmul.mubr.msk.f32.vlgmr.msra.gmra.mrb[4].mxu0 %vm130_vm2, %v216_v27 }
 0x1d5   :  { %v468_v30 = vpop.f32.mrb[2].mxu0 }
 0x1d6   :  { %v214_v31 = vmul.f32 1.442695, %v468_v30  ;;  %v203_v32 = vpop.f32.mrb[3].mxu0 }
 0x1d7   :  { %v212_v33 = vmul.f32 1.442695, %v203_v32 }
 0x1d8   :  { %509 = vpow2.f32 %v214_v31 }
 0x1d9   :  { %511 = vpow2.f32 %v212_v33  ;;  %v286_v40 = vpop.f32.mrb[4].mxu0 }
 0x1da   :  { %v475_v41 = vpop.f32.mrb[5].mxu0  ;;  %v290_v42 = vmul.f32 1.442695, %v286_v40 }
 0x1dc   :  { %513 = vpow2.f32 %v290_v42 }
 0x1e2   :  { %v510_v34 = vpop.eup %509 }
 0x1e3   :  { %v512_v35 = vpop.eup %511 }
 0x1e4   :  { %v493_v36 = vpack.c.bf16 %v510_v34, %v512_v35 }
 0x1e6   :  { %494 = vmatprep.subr.bf16.mxu1 %v493_v36  ;;  %v514_v46 = vpop.eup %513 }
 0x1e7   :  { %496 = vmatpush3.bf16.msra.mxu1 %v493_v36  ;;  %v401_v48 = vrot.slane %v514_v46, %v400_v45  ;;  %v396_v50 = vrot.slane %v514_v46, %v395_v47  ;;  %v413_v55 = vrot.slane %v514_v46, %v412_v49  ;;  %v407_v59 = vrot.slane %v514_v46, %v406_v52 }
 0x1ea   :  { %481 = vmatmul.mubr.msk.f32.vlgmr.msra.gmra.mrb[0].mxu1 %vm130_vm2, %v293_v37 }
 0x1eb   :  { %483 = vmatprep.mubr.msk.f32.mxu1 %vm130_vm2, %v294_v38 }
 0x1ee   :  { %484 = vmatmul.mubr.msk.f32.gmra.mrb[2].mxu1 %vm130_vm2, %v295_v39 }
 0x2bd   :  { %v482_v51 = vpop.f32.mrb[0].mxu1 }
 0x2be   :  { %v402_v53 = vmul.f32 %v482_v51, %v401_v48  ;;  %v374_v54 = vpop.f32.mrb[1].mxu1 }
 0x2bf   :  { %v397_v56 = vmul.f32 %v396_v50, %v374_v54 }
 0x2c1   :  { %v403_v57 = vadd.f32 %v402_v53, %v397_v56  ;;  %v485_v58 = vpop.f32.mrb[2].mxu1 }
 0x2c2   :  { %v414_v60 = vmul.f32 %v485_v58, %v413_v55  ;;  %v384_v61 = vpop.f32.mrb[3].mxu1 }
 0x2c3   :  { %v408_v62 = vmul.f32 %v407_v59, %v384_v61 }
 0x2c5   :  { %v409_v63 = vadd.f32 %v408_v62, %v403_v57 }
 0x2c7   :  { %v415_v0 = vadd.f32 %v414_v60, %v409_v63 }
 0x2c9   :  { %416 = vst [vmem:[#allocation2] sm:$0xff] %v415_v0 }
 0x2ca   :  { %526 = shalt.err (!%p523_p4)
}
 0x2cb   :  { %s527_s13 = scalar_lea.hbm %s627_s5, 128 }
 0x2cc   :  { %p528_p5 = scmp.ne.s32.totalorder %s627_s5, %s527_s13  ;;  %p531_p6 = scmp.lt.u32.totalorder %s527_s13, %s627_s5 }
 0x2ce   :  { %p533_p7 = pnand %p531_p6, %p528_p5 }
 0x2d0   :  { %536 = shalt.err (!%p533_p7)
}
 0x2d1   :  { %426 = dma.vmem_to_hbm [thread:$0]  %s424_s9, 128, %s627_s5, [#allocation3]  }
 0x2d2   :  { %537 = dma.done.wait [#allocation3], 128  }
 0x2d3   :  { %538 = vsyncadd [#allocation3], 4294967168 }
 0x2d4   :  { %430 = vsyncpa [#allocation3], 1 }

</bundles_post_ra>
